<compile_context>
chip_gen: v6e
topology: v6e:2x2x1
jax: 0.10.0
libtpu: 0.0.40
codegen_flags: <defaults>
</compile_context>

<pallas_src>
import functools

import jax
import jax.numpy as jnp
from jax.experimental import pallas as pl
from jax.experimental.pallas import tpu as pltpu


def _channel_attn_kernel(x_ref, w1t_ref, b1_ref, w2t_ref, b2_ref, out_ref,
                         acc_ref, *, inv_hw):
    t = pl.program_id(0)

    @pl.when(t == 0)
    def _():
        acc_ref[...] = jnp.zeros_like(acc_ref)

    # Partial spatial sum for this lane tile: [B, C, thw] -> [B, C].
    acc_ref[...] += jnp.sum(x_ref[...], axis=-1)

    @pl.when(t == pl.num_programs(0) - 1)
    def _():
        pooled = acc_ref[...] * inv_hw                                       # [B, C]
        h = jnp.dot(pooled, w1t_ref[...],
                    preferred_element_type=jnp.float32) + b1_ref[...]        # [B, C//2]
        h = jnp.maximum(h, 0.0)                                              # ReLU
        logits = jnp.dot(h, w2t_ref[...],
                         preferred_element_type=jnp.float32) + b2_ref[...]   # [B, C]
        out_ref[...] = (1.0 / (1.0 + jnp.exp(-logits))).astype(out_ref.dtype)


def _pick_spatial_tile(hw, cap=32768):
    """Largest lane-aligned (multiple of 128) tile dividing hw, capped; else hw."""
    if hw <= cap:
        return hw
    t = cap - cap % 128
    while t >= 128:
        if hw % t == 0:
            return t
        t -= 128
    return hw


def channel_attention(x, w1, b1, w2, b2):
    """x: [B, C, H, W]; w1: [C//2, C]; b1: [C//2]; w2: [C, C//2]; b2: [C].

    Returns the channel attention map [B, C, 1, 1], matching the PyTorch module.
    """
    B, C, H, W = x.shape
    Ch = w1.shape[0]
    HW = H * W
    thw = _pick_spatial_tile(HW)
    n_tiles = HW // thw

    x_flat = x.reshape(B, C, HW).astype(jnp.float32)
    # nn.Linear stores weights as [out, in]; pre-transpose in the wrapper so the
    # kernel never relayouts.  Biases as 2-D rows for clean sublane broadcast.
    w1t = w1.T.astype(jnp.float32)            # [C, C//2]
    w2t = w2.T.astype(jnp.float32)            # [C//2, C]
    b1r = b1.reshape(1, Ch).astype(jnp.float32)
    b2r = b2.reshape(1, C).astype(jnp.float32)

    kernel = functools.partial(_channel_attn_kernel, inv_hw=1.0 / float(HW))

    attn = pl.pallas_call(
        kernel,
        out_shape=jax.ShapeDtypeStruct((B, C), jnp.float32),
        grid_spec=pltpu.PrefetchScalarGridSpec(
            num_scalar_prefetch=0,
            grid=(n_tiles,),
            in_specs=[
                pl.BlockSpec((B, C, thw), lambda t: (0, 0, t)),
                pl.BlockSpec((C, Ch), lambda t: (0, 0)),
                pl.BlockSpec((1, Ch), lambda t: (0, 0)),
                pl.BlockSpec((Ch, C), lambda t: (0, 0)),
                pl.BlockSpec((1, C), lambda t: (0, 0)),
            ],
            out_specs=pl.BlockSpec((B, C), lambda t: (0, 0)),
            scratch_shapes=[pltpu.VMEM((B, C), jnp.float32)],
        ),
        compiler_params=pltpu.CompilerParams(
            dimension_semantics=("arbitrary",)),
    )(x_flat, w1t, b1r, w2t, b2r)

    return attn.reshape(B, C, 1, 1)


def reference(x, w1, b1, w2, b2):
    """Pure-JAX reference (same semantics as the PyTorch ChannelAttention)."""
    pooled = jnp.mean(x, axis=(2, 3))                          # [B, C]
    h = jnp.maximum(pooled @ w1.T + b1, 0.0)                   # [B, C//2]
    attn = 1.0 / (1.0 + jnp.exp(-(h @ w2.T + b2)))             # [B, C]
    return attn[:, :, None, None]                              # [B, C, 1, 1]


if __name__ == "__main__":
    key = jax.random.PRNGKey(0)
    k1, k2, k3, k4, k5 = jax.random.split(key, 5)

    B, C, H, W = 2, 4, 16, 16
    Ch = C // 2
    x = jax.random.normal(k1, (B, C, H, W), jnp.float32)

    # Deterministic nn.Linear-style parameters (PyTorch [out, in] layout; synthetic init).
    w1 = jax.random.normal(k2, (Ch, C), jnp.float32) / jnp.sqrt(float(C))
    b1 = jax.random.normal(k3, (Ch,), jnp.float32) * 0.1
    w2 = jax.random.normal(k4, (C, Ch), jnp.float32) / jnp.sqrt(float(Ch))
    b2 = jax.random.normal(k5, (C,), jnp.float32) * 0.1

    out = channel_attention(x, w1, b1, w2, b2)
    out = jax.block_until_ready(out)

    ref = reference(x, w1, b1, w2, b2)
    assert out.shape == (B, C, 1, 1)
    if not jnp.allclose(out, ref, atol=1e-5, rtol=1e-5):
        raise AssertionError(
            f"mismatch: max abs err = {float(jnp.max(jnp.abs(out - ref)))}")

    print("KERNEL_OK")
</pallas_src>

<mosaic_0001>
module attributes {stable_mosaic.version = 11 : i64} {
  func.func @_channel_attn_kernel(%arg0: i32, %arg1: memref<2x4x256xf32, #tpu.memory_space<vmem>>, %arg2: memref<4x2xf32, #tpu.memory_space<vmem>>, %arg3: memref<1x2xf32, #tpu.memory_space<vmem>>, %arg4: memref<2x4xf32, #tpu.memory_space<vmem>>, %arg5: memref<1x4xf32, #tpu.memory_space<vmem>>, %arg6: memref<2x4xf32, #tpu.memory_space<vmem>>, %arg7: memref<2x4xf32, #tpu.memory_space<vmem>>) attributes {dimension_semantics = [#tpu.dimension_semantics<arbitrary>], iteration_bounds = array<i64: 1>, scalar_prefetch = 0 : i64, scratch_operands = 1 : i64, tpu.core_type = #tpu.core_type<tc>, window_params = [{transform_indices = @transform_0, window_bounds = array<i64: 2, 4, 256>}, {pipeline_mode = #tpu.pipeline_mode<synchronous>, transform_indices = @transform_1, window_bounds = array<i64: 4, 2>}, {pipeline_mode = #tpu.pipeline_mode<synchronous>, transform_indices = @transform_2, window_bounds = array<i64: 1, 2>}, {pipeline_mode = #tpu.pipeline_mode<synchronous>, transform_indices = @transform_3, window_bounds = array<i64: 2, 4>}, {pipeline_mode = #tpu.pipeline_mode<synchronous>, transform_indices = @transform_4, window_bounds = array<i64: 1, 4>}, {pipeline_mode = #tpu.pipeline_mode<synchronous>, transform_indices = @transform_5, window_bounds = array<i64: 2, 4>}]} {
    %c0_i32 = arith.constant 0 : i32
    %0 = arith.cmpi eq, %arg0, %c0_i32 : i32
    %1 = arith.extui %0 : i1 to i32
    %c0_i32_0 = arith.constant 0 : i32
    %2 = arith.cmpi ne, %1, %c0_i32_0 : i32
    scf.if %2 {
      %cst_9 = arith.constant 0.000000e+00 : f32
      %11 = vector.broadcast %cst_9 : f32 to vector<2x4xf32>
      %c0_10 = arith.constant 0 : index
      %c0_11 = arith.constant 0 : index
      %12 = vector.load %arg7[%c0_10, %c0_11] : memref<2x4xf32, #tpu.memory_space<vmem>>, vector<2x4xf32>
      tpu.vector_store %arg7[%c0_10, %c0_11], %11 {strides = array<i32>} : memref<2x4xf32, #tpu.memory_space<vmem>>, vector<2x4xf32>,
    } else {
    }
    %c0 = arith.constant 0 : index
    %c0_1 = arith.constant 0 : index
    %3 = vector.load %arg7[%c0, %c0_1] : memref<2x4xf32, #tpu.memory_space<vmem>>, vector<2x4xf32>
    %c0_2 = arith.constant 0 : index
    %c0_3 = arith.constant 0 : index
    %c0_4 = arith.constant 0 : index
    %4 = vector.load %arg1[%c0_2, %c0_3, %c0_4] : memref<2x4x256xf32, #tpu.memory_space<vmem>>, vector<2x4x256xf32>
    %cst = arith.constant dense<0.000000e+00> : vector<2x4xf32>
    %5 = vector.multi_reduction <add>, %4, %cst [2] : vector<2x4x256xf32> to vector<2x4xf32>
    %6 = arith.addf %3, %5 : vector<2x4xf32>
    %c0_5 = arith.constant 0 : index
    %c0_6 = arith.constant 0 : index
    %7 = vector.load %arg7[%c0_5, %c0_6] : memref<2x4xf32, #tpu.memory_space<vmem>>, vector<2x4xf32>
    tpu.vector_store %arg7[%c0_5, %c0_6], %6 {strides = array<i32>} : memref<2x4xf32, #tpu.memory_space<vmem>>, vector<2x4xf32>,
    %c0_i32_7 = arith.constant 0 : i32
    %8 = arith.cmpi eq, %arg0, %c0_i32_7 : i32
    %9 = arith.extui %8 : i1 to i32
    %c0_i32_8 = arith.constant 0 : i32
    %10 = arith.cmpi ne, %9, %c0_i32_8 : i32
    scf.if %10 {
      %c0_9 = arith.constant 0 : index
      %c0_10 = arith.constant 0 : index
      %11 = vector.load %arg7[%c0_9, %c0_10] : memref<2x4xf32, #tpu.memory_space<vmem>>, vector<2x4xf32>
      %cst_11 = arith.constant 3.906250e-03 : f32
      %12 = vector.broadcast %cst_11 : f32 to vector<2x4xf32>
      %13 = arith.mulf %11, %12 : vector<2x4xf32>
      %c0_12 = arith.constant 0 : index
      %c0_13 = arith.constant 0 : index
      %14 = vector.load %arg2[%c0_12, %c0_13] : memref<4x2xf32, #tpu.memory_space<vmem>>, vector<4x2xf32>
      %cst_14 = arith.constant dense<0.000000e+00> : vector<2x2xf32>
      %15 = tpu.matmul %13, %14, %cst_14 {dimension_numbers = #tpu.dot_dimension_numbers<[1], [0], [0], [1], [0, 0, 1, 1], [], []>} : vector<2x4xf32>, vector<4x2xf32>, vector<2x2xf32> -> vector<2x2xf32>
      %c0_15 = arith.constant 0 : index
      %c0_16 = arith.constant 0 : index
      %16 = vector.load %arg3[%c0_15, %c0_16] : memref<1x2xf32, #tpu.memory_space<vmem>>, vector<1x2xf32>
      %17 = vector.broadcast %16 : vector<1x2xf32> to vector<2x2xf32>
      %18 = arith.addf %15, %17 : vector<2x2xf32>
      %cst_17 = arith.constant 0.000000e+00 : f32
      %19 = vector.broadcast %cst_17 : f32 to vector<2x2xf32>
      %20 = arith.maximumf %18, %19 : vector<2x2xf32>
      %c0_18 = arith.constant 0 : index
      %c0_19 = arith.constant 0 : index
      %21 = vector.load %arg4[%c0_18, %c0_19] : memref<2x4xf32, #tpu.memory_space<vmem>>, vector<2x4xf32>
      %cst_20 = arith.constant dense<0.000000e+00> : vector<2x4xf32>
      %22 = tpu.matmul %20, %21, %cst_20 {dimension_numbers = #tpu.dot_dimension_numbers<[1], [0], [0], [1], [0, 0, 1, 1], [], []>} : vector<2x2xf32>, vector<2x4xf32>, vector<2x4xf32> -> vector<2x4xf32>
      %c0_21 = arith.constant 0 : index
      %c0_22 = arith.constant 0 : index
      %23 = vector.load %arg5[%c0_21, %c0_22] : memref<1x4xf32, #tpu.memory_space<vmem>>, vector<1x4xf32>
      %24 = vector.broadcast %23 : vector<1x4xf32> to vector<2x4xf32>
      %25 = arith.addf %22, %24 : vector<2x4xf32>
      %cst_23 = arith.constant 0.000000e+00 : f32
      %26 = vector.broadcast %cst_23 : f32 to vector<2x4xf32>
      %27 = arith.subf %26, %25 : vector<2x4xf32>
      %28 = math.exp %27 : vector<2x4xf32>
      %cst_24 = arith.constant 1.000000e+00 : f32
      %29 = vector.broadcast %cst_24 : f32 to vector<2x4xf32>
      %30 = arith.addf %29, %28 : vector<2x4xf32>
      %cst_25 = arith.constant 1.000000e+00 : f32
      %31 = vector.broadcast %cst_25 : f32 to vector<2x4xf32>
      %32 = arith.divf %31, %30 : vector<2x4xf32>
      %c0_26 = arith.constant 0 : index
      %c0_27 = arith.constant 0 : index
      %33 = vector.load %arg6[%c0_26, %c0_27] : memref<2x4xf32, #tpu.memory_space<vmem>>, vector<2x4xf32>
      tpu.vector_store %arg6[%c0_26, %c0_27], %32 {strides = array<i32>} : memref<2x4xf32, #tpu.memory_space<vmem>>, vector<2x4xf32>,
    } else {
    }
    return
  }
  func.func @transform_0(%arg0: i32) -> (i32, i32, i32) {
    %c0_i32 = arith.constant 0 : i32
    %c0_i32_0 = arith.constant 0 : i32
    %c0_i32_1 = arith.constant 0 : i32
    return %c0_i32, %c0_i32_0, %arg0 : i32, i32, i32
  }
  func.func @transform_1(%arg0: i32) -> (i32, i32) {
    %c0_i32 = arith.constant 0 : i32
    %c0_i32_0 = arith.constant 0 : i32
    %c0_i32_1 = arith.constant 0 : i32
    return %c0_i32, %c0_i32_0 : i32, i32
  }
  func.func @transform_2(%arg0: i32) -> (i32, i32) {
    %c0_i32 = arith.constant 0 : i32
    %c0_i32_0 = arith.constant 0 : i32
    %c0_i32_1 = arith.constant 0 : i32
    return %c0_i32, %c0_i32_0 : i32, i32
  }
  func.func @transform_3(%arg0: i32) -> (i32, i32) {
    %c0_i32 = arith.constant 0 : i32
    %c0_i32_0 = arith.constant 0 : i32
    %c0_i32_1 = arith.constant 0 : i32
    return %c0_i32, %c0_i32_0 : i32, i32
  }
  func.func @transform_4(%arg0: i32) -> (i32, i32) {
    %c0_i32 = arith.constant 0 : i32
    %c0_i32_0 = arith.constant 0 : i32
    %c0_i32_1 = arith.constant 0 : i32
    return %c0_i32, %c0_i32_0 : i32, i32
  }
  func.func @transform_5(%arg0: i32) -> (i32, i32) {
    %c0_i32 = arith.constant 0 : i32
    %c0_i32_0 = arith.constant 0 : i32
    %c0_i32_1 = arith.constant 0 : i32
    return %c0_i32, %c0_i32_0 : i32, i32
  }
}

</mosaic_0001>

<bundles_post_ra>
// kernel: tpu_custom_call.1
= control target key start
LH: loop header
LB: loop body
LE: loop exit
PB: predicated region body
PF: predicated region fallthrough
CT: control target
= control target key end

     0   :  { %10 = vsyncpa [#allocation4], 0  ;;  %s416_s0 = inlined_call_operand.hbm [shape: f32[2,4,256], index: 0, kind: input, shape index: {}]   ;;  %s417_s1 = inlined_call_operand.vmem [shape: f32[4,2], index: 1, kind: input, shape index: {}]   ;;  %s418_s2 = inlined_call_operand.vmem [shape: f32[1,2], index: 2, kind: input, shape index: {}]   ;;  %s419_s3 = inlined_call_operand.vmem [shape: f32[2,4], index: 3, kind: input, shape index: {}]   ;;  %s420_s4 = inlined_call_operand.vmem [shape: f32[1,4], index: 4, kind: input, shape index: {}]   ;;  %s421_s5 = inlined_call_operand.hbm [shape: f32[2,4], index: 5, kind: output, shape index: {}]  }
   0x1   :  { %11 = vsyncpa [#allocation5], 0  ;;  %s354_s18 = smov [#allocation3]  }
   0x2   :  { %s17_s19 = sshll.u32 %s354_s18, 4  ;;  %s18_s19 = int_to_ptr.vmem [resolvable:$true] %s17_s19 }
   0x3   :  { %s318_s20 = scalar_lea.vmem %s18_s19, 256  ;;  %p323_p1 = scmp.lt.s32.totalorder %s18_s19, %s18_s19 }
   0x4   :  { %p319_p0 = scmp.ne.s32.totalorder %s18_s19, %s318_s20  ;;  %p324_p2 = scmp.lt.s32.totalorder %s318_s20, %s318_s20 }
   0x6   :  { %p325_p3 = por %p324_p2, %p323_p1 }
   0x8   :  { %p326_p4 = pnand %p325_p3, %p319_p0 }
   0xa   :  { %329 = shalt.err (!%p326_p4)
}
   0xb   :  { %s355_s21 = smov 128   ;;  %s356_s22 = smov 8  }
   0xc   :  { %23 = dma.hbm_to_vmem [thread:$0]  %s416_s0, 256, %s18_s19, [#allocation4], %s355_s21, %s355_s21, %s356_s22  }
   0xd   :  { %350 = dma.done.wait [#allocation4], 256  }
   0xe   :  { %351 = vsyncadd [#allocation4], 4294967040  ;;  %vm50_vm0 = vcmask 1043456   ;;  %v42_v0 = vld [vmem:[#allocation3] sm:$0xff]  ;;  %v43_v1 = vld [vmem:[#allocation3 + $0x8] sm:$0xff]  ;;  %vm39_vm1 = vcmask 25600   ;;  %v63_v12 = vlaneseq }
   0xf   :  { %v46_v2 = vcombine.high %v42_v0, %v42_v0  ;;  %v51_v3 = vsel %vm50_vm0, %v42_v0, 0.0  ;;  %v47_v4 = vcombine.high %v43_v1, %v43_v1  ;;  %v56_v6 = vsel %vm50_vm0, %v43_v1, 0.0  ;;  %v84_v11 = vld [vmem:[%s417_s1] sm:$0xf] }
  0x10   :  { %v357_v10 = vmov 0.0   ;;  %vm358_vm2 = vmmov 0   ;;  %v64_v13 = vand.u32 127, %v63_v12  ;;  %v66_v14 = vshrl.u32 %v63_v12, 7  ;;  %v170_v25 = vld [vmem:[%s419_s3] sm:$0x3] }
  0x11   :  { %v52_v5 = vsel %vm50_vm0, %v46_v2, 0.0  ;;  %v57_v7 = vsel %vm50_vm0, %v47_v4, 0.0  ;;  %40 = vst.msk [vmem:[#allocation2] sm:$0x3] %vm39_vm1, %v357_v10  ;;  %288 = vmatprep.subr.mxu0 %v357_v10  ;;  %293 = vmatprep.subr.mxu1 %v357_v10  ;;  %vm73_vm3 = vcmask 1041409   ;;  %vm92_vm4 = vcmask 31744  }
  0x12   :  { %v53_v8 = vadd.f32 %v52_v5, %v51_v3  ;;  %v58_v9 = vadd.f32 %v57_v7, %v56_v6  ;;  %289 = vmatpush3.msk.msra.mxu0 %vm50_vm0, %v84_v11  ;;  %290 = vmatprep.mubr.msk.f32.mxu0 %vm358_vm2, %v357_v10  ;;  %v67_v16 = vsub.s32 %v64_v13, %v66_v14  ;;  %vm182_vm5 = vcmask 1041408   ;;  %v278_v26 = vld [vmem:[%s418_s2] ss:$0 sm:$0xff]  ;;  %s359_s2 = smov [#allocation6]  }
  0x13   :  { %295 = vmatprep.mubr.msk.f32.mxu1 %vm358_vm2, %v357_v10  ;;  %294 = vmatpush3.msk.msra.mxu1 %vm182_vm5, %v170_v25  ;;  %vm178_vm6 = vcmask 15360   ;;  %v281_v31 = vld [vmem:[%s420_s4] ss:$0 sm:$0xff]  ;;  %s269_s3 = sshll.u32 %s359_s2, 4  ;;  %s270_s3 = int_to_ptr.vmem [resolvable:$true] %s269_s3 }
  0x14   :  { %54 = vadd.xlane.f32.xlu0 %v53_v8  ;;  %s330_s6 = scalar_lea.vmem %s270_s3, 32  ;;  %p335_p6 = scmp.lt.s32.totalorder %s270_s3, %s270_s3 }
  0x15   :  { %p331_p5 = scmp.ne.s32.totalorder %s270_s3, %s330_s6  ;;  %p336_p7 = scmp.lt.s32.totalorder %s330_s6, %s330_s6 }
  0x17   :  { %p337_p8 = por %p336_p7, %p335_p6 }
  0x18   :  { %59 = vadd.xlane.f32.xlu0 %v58_v9  ;;  %v41_v20 = vld [vmem:[#allocation2] sm:$0x3] }
  0x19   :  { %p338_p9 = pnand %p337_p8, %p331_p5 }
  0x9d   :  { %v55_v15 = vpop.xlane.xlu0 %54 }
  0x9e   :  { %v68_v18 = vrot.slane %v55_v15, %v67_v16 }
  0xa1   :  { %v60_v17 = vpop.xlane.xlu0 %59 }
  0xa2   :  { %v72_v19 = vrot.slane %v60_v17, %v67_v16 }
  0xa4   :  { %v74_v21 = vsel %vm73_vm3, %v72_v19, %v68_v18 }
  0xa5   :  { %v76_v22 = vadd.f32 %v74_v21, %v41_v20 }
  0xa7   :  { %78 = vst.msk [vmem:[#allocation2] sm:$0x3] %vm39_vm1, %v76_v22 }
  0xae   :  { %v82_v23 = vld [vmem:[#allocation2] sm:$0x3] }
  0xaf   :  { %v83_v24 = vmul.f32 0.00390625, %v82_v23 }
  0xb1   :  { %291 = vmatmul.mubr.msk.f32.vlgmr.msra.gmra.mxu0 %vm92_vm4, %v83_v24 }
 0x171   :  { %v165_v27 = vpop.f32.mrf.mxu0 }
 0x172   :  { %v166_v28 = vadd.f32 %v278_v26, %v165_v27 }
 0x173   :  { %v292_v29 = vpop.f32.mrf.mxu0 }
 0x174   :  { %v169_v30 = vmax.f32 %v166_v28, 0.0 }
 0x176   :  { %296 = vmatmul.mubr.msk.f32.vlgmr.msra.gmra.mxu1 %vm178_vm6, %v169_v30 }
 0x236   :  { %v252_v32 = vpop.f32.mrf.mxu1 }
 0x237   :  { %v253_v33 = vadd.f32 %v281_v31, %v252_v32 }
 0x238   :  { %v297_v34 = vpop.f32.mrf.mxu1 }
 0x239   :  { %v256_v35 = vsub.f32 0.0, %v253_v33 }
 0x23b   :  { %v257_v36 = vmul.f32 1.442695, %v256_v35 }
 0x23d   :  { %306 = vpow2.f32 %v257_v36 }
 0x24a   :  { %v307_v37 = vpop.eup %306 }
 0x24b   :  { %v259_v38 = vadd.f32 1.0, %v307_v37 }
 0x24d   :  { %308 = vrcp.f32 %v259_v38 }
 0x25a   :  { %v309_v39 = vpop.eup %308 }
 0x25b   :  { %262 = vst.msk [vmem:[#allocation6] sm:$0x3] %vm39_vm1, %v309_v39 }
 0x25c   :  { %341 = shalt.err (!%p338_p9)
}
 0x25d   :  { %272 = dma.vmem_to_hbm [thread:$0]  %s270_s3, 32, %s421_s5, [#allocation5]  }
 0x25e   :  { %352 = dma.done.wait [#allocation5], 32  }
 0x25f   :  { %353 = vsyncadd [#allocation5], 4294967264 }
 0x260   :  { %276 = vsyncpa [#allocation4], 1 }
 0x261   :  { %277 = vsyncpa [#allocation5], 1 }

</bundles_post_ra>
